<compile_context>
chip_gen: v6e
topology: v6e:2x2x1
jax: 0.10.0
libtpu: 0.0.40
codegen_flags: <defaults>
</compile_context>

<pallas_src>
import functools

import jax
import jax.numpy as jnp
from jax.experimental import pallas as pl
from jax.experimental.pallas import tpu as pltpu


def _round_up(n, m):
    return ((n + m - 1) // m) * m


# ----------------------------------------------------------------------------
# Fused kernel: one grid step == one head.
# ----------------------------------------------------------------------------
def _metanet_fused_kernel(x_ref, w1_ref, b1_ref, w2_ref, b2_ref, o_ref):
    """
    x_ref : (B_pad, 1920)    f32   -- resident across the head axis (DMA'd once)
    w1_ref: (1920, 128)      bf16  -- hidden-layer columns for this head
    b1_ref: (1, 128)         f32
    w2_ref: (1, 128, P_pad)  bf16  -- this head's (padded) output projection
    b2_ref: (1, 1, P_pad)    f32
    o_ref : (1, B_pad, P_pad) f32  -- lane-dense padded output block
    """
    x = x_ref[...].astype(jnp.bfloat16)
    h = jnp.dot(x, w1_ref[...], preferred_element_type=jnp.float32)
    h = jnp.maximum(h + b1_ref[...], 0.0)
    out = jnp.dot(h.astype(jnp.bfloat16), w2_ref[0],
                  preferred_element_type=jnp.float32)
    o_ref[0] = out + b2_ref[0]


def metanet_fused(x_pad, w1_bf16, b1, w2_stacked, b2_stacked):
    """x_pad: (B_pad, 1920) f32; w1: (1920, 128*N) bf16; b1: (1, 128*N) f32;
    w2_stacked: (N, 128, P_pad) bf16; b2_stacked: (N, 1, P_pad) f32.
    Returns (N, B_pad, P_pad) f32."""
    B_pad, K = x_pad.shape
    num_heads, D, P_pad = w2_stacked.shape

    flops = 2 * B_pad * K * D * num_heads + 2 * B_pad * D * P_pad * num_heads
    bytes_accessed = (
        x_pad.size * 4 + w1_bf16.size * 2 + b1.size * 4
        + w2_stacked.size * 2 + b2_stacked.size * 4
        + num_heads * B_pad * P_pad * 4
    )

    return pl.pallas_call(
        _metanet_fused_kernel,
        out_shape=jax.ShapeDtypeStruct((num_heads, B_pad, P_pad), jnp.float32),
        grid=(num_heads,),
        in_specs=[
            pl.BlockSpec((B_pad, K), lambda i: (0, 0)),        # x (resident)
            pl.BlockSpec((K, D), lambda i: (0, i)),            # W1 columns, head i
            pl.BlockSpec((1, D), lambda i: (0, i)),            # b1 slice, head i
            pl.BlockSpec((1, D, P_pad), lambda i: (i, 0, 0)),  # head weight
            pl.BlockSpec((1, 1, P_pad), lambda i: (i, 0, 0)),  # head bias
        ],
        out_specs=pl.BlockSpec((1, B_pad, P_pad), lambda i: (i, 0, 0)),
        compiler_params=pltpu.CompilerParams(
            dimension_semantics=("parallel",),  # v7x: split heads over 2 TCs
        ),
        cost_estimate=pl.CostEstimate(
            flops=flops, transcendentals=0, bytes_accessed=bytes_accessed),
    )(x_pad, w1_bf16, b1, w2_stacked, b2_stacked)


# ----------------------------------------------------------------------------
# MetaNet wrapper (att_type='none')
# ----------------------------------------------------------------------------
class MetaNetPallas:
    IN_FEATURES = 1920
    HEAD_DIM = 128

    def __init__(self, param_dict, key):
        self.param_dict = dict(param_dict)
        self.names = list(self.param_dict.keys())
        self.sizes = [self.param_dict[n] for n in self.names]
        self.param_num = len(self.names)
        H = self.HEAD_DIM * self.param_num
        self.p_pad = max(128, _round_up(max(self.sizes), 128))

        def linear_init(key, fan_in, fan_out):
            # torch.nn.Linear default init: U(-1/sqrt(fan_in), 1/sqrt(fan_in))
            kw, kb = jax.random.split(key)
            bound = 1.0 / jnp.sqrt(fan_in)
            w = jax.random.uniform(kw, (fan_in, fan_out), jnp.float32, -bound, bound)
            b = jax.random.uniform(kb, (fan_out,), jnp.float32, -bound, bound)
            return w, b

        keys = jax.random.split(key, 1 + self.param_num)
        w1, b1 = linear_init(keys[0], self.IN_FEATURES, H)
        self._w1_f32, self._b1_f32 = w1, b1             # f32 copies for reference
        self.w1 = w1.astype(jnp.bfloat16)               # bf16: halve weight HBM traffic
        self.b1 = b1.reshape(1, H)

        w2 = jnp.zeros((self.param_num, self.HEAD_DIM, self.p_pad), jnp.float32)
        b2 = jnp.zeros((self.param_num, 1, self.p_pad), jnp.float32)
        self._heads_f32 = []
        for i, p in enumerate(self.sizes):
            wi, bi = linear_init(keys[1 + i], self.HEAD_DIM, p)
            self._heads_f32.append((wi, bi))
            w2 = w2.at[i, :, :p].set(wi)
            b2 = b2.at[i, 0, :p].set(bi)
        self.w2 = w2.astype(jnp.bfloat16)
        self.b2 = b2

    @functools.partial(jax.jit, static_argnums=0)
    def _fused(self, x_pad):
        return metanet_fused(x_pad, self.w1, self.b1, self.w2, self.b2)

    def __call__(self, mean_std_features):
        B = mean_std_features.shape[0]
        B_pad = _round_up(max(B, 8), 8)  # full 8-sublane vregs
        x_pad = jnp.zeros((B_pad, self.IN_FEATURES), jnp.float32)
        x_pad = x_pad.at[:B].set(mean_std_features.astype(jnp.float32))

        out = self._fused(x_pad)  # (num_heads, B_pad, P_pad)

        filters = {}
        for i, name in enumerate(self.names):
            filters[name] = out[i, :B, :self.sizes[i]]
        return filters

    # pure-JAX f32 reference (PyTorch semantics) for the correctness check
    def reference(self, x):
        hidden = jax.nn.relu(x @ self._w1_f32 + self._b1_f32)
        out = {}
        for i, name in enumerate(self.names):
            wi, bi = self._heads_f32[i]
            out[name] = hidden[:, i * 128:(i + 1) * 128] @ wi + bi
        return out


if __name__ == "__main__":
    key = jax.random.PRNGKey(0)
    k_x, k_params = jax.random.split(key)

    # Three predicted parameter groups of differing sizes (like the torch module).
    param_dict = {"conv1_weight": 64, "conv2_weight": 128, "conv3_weight": 192}

    B = 4
    x = jax.random.normal(k_x, (B, MetaNetPallas.IN_FEATURES), jnp.float32)

    net = MetaNetPallas(param_dict, k_params)
    filters = net(x)
    jax.block_until_ready(filters)

    ref = net.reference(x)
    for name in param_dict:
        assert filters[name].shape == (B, param_dict[name])
        # bf16 weights -> loosened tolerance vs. the f32 reference
        assert jnp.allclose(filters[name], ref[name], atol=2e-2, rtol=2e-2), (
            name, float(jnp.max(jnp.abs(filters[name] - ref[name]))))

    print("KERNEL_OK")
</pallas_src>

<mosaic_0001>
module attributes {stable_mosaic.version = 11 : i64} {
  func.func @_metanet_fused_kernel(%arg0: i32, %arg1: memref<8x1920xf32, #tpu.memory_space<vmem>>, %arg2: memref<1920x128xbf16, #tpu.memory_space<vmem>>, %arg3: memref<1x128xf32, #tpu.memory_space<vmem>>, %arg4: memref<1x128x256xbf16, #tpu.memory_space<vmem>>, %arg5: memref<1x1x256xf32, #tpu.memory_space<vmem>>, %arg6: memref<1x8x256xf32, #tpu.memory_space<vmem>>) attributes {dimension_semantics = [#tpu.dimension_semantics<parallel>], iteration_bounds = array<i64: 3>, scalar_prefetch = 0 : i64, scratch_operands = 0 : i64, tpu.core_type = #tpu.core_type<tc>, window_params = [{pipeline_mode = #tpu.pipeline_mode<synchronous>, transform_indices = @transform_0, window_bounds = array<i64: 8, 1920>}, {transform_indices = @transform_1, window_bounds = array<i64: 1920, 128>}, {transform_indices = @transform_2, window_bounds = array<i64: 1, 128>}, {transform_indices = @transform_3, window_bounds = array<i64: 1, 128, 256>}, {transform_indices = @transform_4, window_bounds = array<i64: 1, 1, 256>}, {transform_indices = @transform_5, window_bounds = array<i64: 1, 8, 256>}]} {
    %c0 = arith.constant 0 : index
    %c0_0 = arith.constant 0 : index
    %0 = vector.load %arg1[%c0, %c0_0] : memref<8x1920xf32, #tpu.memory_space<vmem>>, vector<8x1920xf32>
    %1 = arith.truncf %0 : vector<8x1920xf32> to vector<8x1920xbf16>
    %c0_1 = arith.constant 0 : index
    %c0_2 = arith.constant 0 : index
    %2 = vector.load %arg2[%c0_1, %c0_2] : memref<1920x128xbf16, #tpu.memory_space<vmem>>, vector<1920x128xbf16>
    %cst = arith.constant dense<0.000000e+00> : vector<8x128xf32>
    %3 = tpu.matmul %1, %2, %cst {dimension_numbers = #tpu.dot_dimension_numbers<[1], [0], [0], [1], [0, 0, 1, 1], [], []>} : vector<8x1920xbf16>, vector<1920x128xbf16>, vector<8x128xf32> -> vector<8x128xf32>
    %c0_3 = arith.constant 0 : index
    %c0_4 = arith.constant 0 : index
    %4 = vector.load %arg3[%c0_3, %c0_4] : memref<1x128xf32, #tpu.memory_space<vmem>>, vector<1x128xf32>
    %5 = vector.broadcast %4 : vector<1x128xf32> to vector<8x128xf32>
    %6 = arith.addf %3, %5 : vector<8x128xf32>
    %cst_5 = arith.constant 0.000000e+00 : f32
    %7 = vector.broadcast %cst_5 : f32 to vector<8x128xf32>
    %8 = arith.maximumf %6, %7 : vector<8x128xf32>
    %9 = arith.truncf %8 : vector<8x128xf32> to vector<8x128xbf16>
    %c0_6 = arith.constant 0 : index
    %c0_7 = arith.constant 0 : index
    %c0_8 = arith.constant 0 : index
    %10 = vector.load %arg4[%c0_6, %c0_7, %c0_8] : memref<1x128x256xbf16, #tpu.memory_space<vmem>>, vector<1x128x256xbf16>
    %11 = vector.shape_cast %10 : vector<1x128x256xbf16> to vector<128x256xbf16>
    %cst_9 = arith.constant dense<0.000000e+00> : vector<8x256xf32>
    %12 = tpu.matmul %9, %11, %cst_9 {dimension_numbers = #tpu.dot_dimension_numbers<[1], [0], [0], [1], [0, 0, 1, 1], [], []>} : vector<8x128xbf16>, vector<128x256xbf16>, vector<8x256xf32> -> vector<8x256xf32>
    %c0_10 = arith.constant 0 : index
    %c0_11 = arith.constant 0 : index
    %c0_12 = arith.constant 0 : index
    %13 = vector.load %arg5[%c0_10, %c0_11, %c0_12] : memref<1x1x256xf32, #tpu.memory_space<vmem>>, vector<1x1x256xf32>
    %14 = vector.shape_cast %13 : vector<1x1x256xf32> to vector<1x256xf32>
    %15 = vector.broadcast %14 : vector<1x256xf32> to vector<8x256xf32>
    %16 = arith.addf %12, %15 : vector<8x256xf32>
    %c0_13 = arith.constant 0 : index
    %c0_14 = arith.constant 0 : index
    %c0_15 = arith.constant 0 : index
    %17 = vector.load %arg6[%c0_13, %c0_14, %c0_15] : memref<1x8x256xf32, #tpu.memory_space<vmem>>, vector<1x8x256xf32>
    %18 = vector.shape_cast %17 : vector<1x8x256xf32> to vector<8x256xf32>
    %19 = vector.shape_cast %16 : vector<8x256xf32> to vector<1x8x256xf32>
    tpu.vector_store %arg6[%c0_13, %c0_14, %c0_15], %19 {strides = array<i32>} : memref<1x8x256xf32, #tpu.memory_space<vmem>>, vector<1x8x256xf32>,
    return
  }
  func.func @transform_0(%arg0: i32) -> (i32, i32) {
    %c0_i32 = arith.constant 0 : i32
    %c0_i32_0 = arith.constant 0 : i32
    %c0_i32_1 = arith.constant 0 : i32
    return %c0_i32, %c0_i32_0 : i32, i32
  }
  func.func @transform_1(%arg0: i32) -> (i32, i32) {
    %c0_i32 = arith.constant 0 : i32
    %c0_i32_0 = arith.constant 0 : i32
    return %c0_i32, %arg0 : i32, i32
  }
  func.func @transform_2(%arg0: i32) -> (i32, i32) {
    %c0_i32 = arith.constant 0 : i32
    %c0_i32_0 = arith.constant 0 : i32
    return %c0_i32, %arg0 : i32, i32
  }
  func.func @transform_3(%arg0: i32) -> (i32, i32, i32) {
    %c0_i32 = arith.constant 0 : i32
    %c0_i32_0 = arith.constant 0 : i32
    %c0_i32_1 = arith.constant 0 : i32
    return %arg0, %c0_i32, %c0_i32_0 : i32, i32, i32
  }
  func.func @transform_4(%arg0: i32) -> (i32, i32, i32) {
    %c0_i32 = arith.constant 0 : i32
    %c0_i32_0 = arith.constant 0 : i32
    %c0_i32_1 = arith.constant 0 : i32
    return %arg0, %c0_i32, %c0_i32_0 : i32, i32, i32
  }
  func.func @transform_5(%arg0: i32) -> (i32, i32, i32) {
    %c0_i32 = arith.constant 0 : i32
    %c0_i32_0 = arith.constant 0 : i32
    %c0_i32_1 = arith.constant 0 : i32
    return %arg0, %c0_i32, %c0_i32_0 : i32, i32, i32
  }
}

</mosaic_0001>

<bundles_post_ra>
// kernel: _fused.1
= control target key start
LH: loop header
LB: loop body
LE: loop exit
PB: predicated region body
PF: predicated region fallthrough
CT: control target
= control target key end

     0   :  { %s3251_s0 = inlined_call_operand.hbm [shape: f32[8,1920], index: 0, kind: input, shape index: {}]   ;;  %s3252_s1 = inlined_call_operand.hbm [shape: bf16[1920,384], index: 1, kind: input, shape index: {}]   ;;  %s3253_s2 = inlined_call_operand.hbm [shape: f32[1,384], index: 2, kind: input, shape index: {}]   ;;  %s3254_s3 = inlined_call_operand.hbm [shape: bf16[3,128,256], index: 3, kind: input, shape index: {}]   ;;  %s3255_s4 = inlined_call_operand.hbm [shape: f32[3,1,256], index: 4, kind: input, shape index: {}]   ;;  %s3256_s5 = inlined_call_operand.hbm [shape: f32[3,8,256], index: 5, kind: output, shape index: {}]  }
   0x1   :  { %3266 = sst [smem:[#allocation19_spill]] %s3252_s1 }
   0x2   :  { %3267 = sst [smem:[#allocation20_spill]] %s3254_s3 }
   0x3   :  { %10 = vsyncpa [#allocation3], 0 }
   0x4   :  { %11 = vsyncpa [#allocation6], 0 }
   0x5   :  { %13 = vsyncpa [#allocation6 + $0x1], 0 }
   0x6   :  { %14 = vsyncpa [#allocation9], 0 }
   0x7   :  { %16 = vsyncpa [#allocation9 + $0x1], 0 }
   0x8   :  { %17 = vsyncpa [#allocation4], 0 }
   0x9   :  { %19 = vsyncpa [#allocation4 + $0x1], 0  ;;  %s2816_s18 = smov 0   ;;  %s2818_s19 = smov 0  }
   0xa   :  { %s2820_s20 = smov 0   ;;  %s2822_s21 = smov 0  }
   0xb LB: > { %3268 = sst [smem:[#allocation16_spill]] %s2766_s20  ;;  %s2837_s22 = sadd.s32 1, %s2770_s21   ;;  %s2770_s21 = sphi %s2822_s21, %s3289_s21   ;;  %s2766_s20 = sphi %s2820_s20, %s3291_s20   ;;  %s2762_s19 = sphi %s2818_s19, %s3293_s19   ;;  %s2758_s18 = sphi %s2816_s18, %s3292_s18  }
   0xc   : > { %3269 = sst [smem:[#allocation17_spill]] %s2837_s22  ;;  %s53_s23 = sadd.s32 1, %s2766_s20 }
   0xd   : > { %s50_s24 = ssub.s32 %s2770_s21, %s2837_s22  ;;  %p3257_p0 = scmp.ne.s32.totalorder %s2766_s20, %s2762_s19 }
   0xe   : > { %p51_p1 = scmp.eq.s32.totalorder %s50_s24, 0  ;;  %p61_p2 = scmp.eq.s32.totalorder %s2770_s21, 0 }
   0xf   : > { %p2372_p3 = scmp.lt.s32.totalorder %s2770_s21, 3  ;;  %s205_s26 = sand.u32 1, %s2770_s21  }
  0x10   : > { %s2847_s25 = scalar_select %p51_p1, %s2766_s20, %s53_s23  }
  0x11   : > { %p62_p4 = por %p61_p2, %p3257_p0  ;;  %s2854_s27 = sand.u32 1, %s2766_s20  }
  0x12   : > { %3270 = sst [smem:[#allocation18_spill]] %s2847_s25  ;;  %s2334_s28 = smul.u32 960, %s2854_s27 }
  0x13   : > { %s1993_s29 = sshll.u32 %s2770_s21, 6  ;;  %s3271_s1 = sld [smem:[#allocation19_spill]] }
  0x14   : > { %p2863_p5 = pnand %p2372_p3, %p62_p4  ;;  %s209_s9 = scalar_lea.vmem [#allocation5], %s2334_s28 }
  0x15   : > { %s215_s10 = sshll.u32 %s209_s9, 4  ;;  %s2871_s11 = scalar_lea.sflag [#allocation6], %s205_s26  ;;  %s2867_s10 = int_to_ptr.vmem [resolvable:$true] %s215_s10 }
  0x16   : > { %p2877_p7 = pneg %p2863_p5 }
  0x19   : > { %s2861_s7 = scalar_lea.hbm %s3271_s1, %s1993_s29  ;;  %s2565_s16 = scalar_lea.hbm %s3271_s1, 46080 }
  0x1a   : > { %s2560_s12 = scalar_lea.hbm %s2861_s7, 15360  ;;  %p2566_p10 = scmp.lt.s32.totalorder %s2861_s7, %s3271_s1 }
  0x1b   : > { %p2561_p6 = scmp.ne.s32.totalorder %s2861_s7, %s2560_s12  ;;  %p2567_p11 = scmp.lt.s32.totalorder %s2565_s16, %s2560_s12 }
  0x1d   : > { %p2563_p8 = pnand %p2877_p7, %p2561_p6  ;;  %p2568_p12 = por %p2567_p11, %p2566_p10 }
  0x1f   : > { %p2564_p9 = pneg %p2563_p8 }
  0x21   : > { %p2569_p13 = pnand %p2568_p12, %p2564_p9 }
  0x23   : > { %2572 = shalt.err (!%p2569_p13)
}
  0x24   : > { %s2573_s24 = scalar_lea.vmem %s2867_s10, 15360  ;;  %s2772_s28 = smov [#allocation5]  }
  0x25   : > { %p2574_p1 = scmp.ne.s32.totalorder %s2867_s10, %s2573_s24  ;;  %s2578_s29 = sshll.u32 %s2772_s28, 4  ;;  %s2579_s29 = int_to_ptr.vmem [resolvable:$false] %s2578_s29 }
  0x26   : > { %s2580_s30 = scalar_lea.vmem %s2579_s29, 30720  ;;  %p2581_p4 = scmp.lt.s32.totalorder %s2867_s10, %s2579_s29 }
  0x27   : > { %p2576_p2 = pnand %p2574_p1, %p2877_p7  ;;  %p2582_p6 = scmp.lt.s32.totalorder %s2580_s30, %s2573_s24 }
  0x29   : > { %p2577_p3 = pneg %p2576_p2  ;;  %p2583_p8 = por %p2582_p6, %p2581_p4 }
  0x2b   : > { %p2584_p0 = pnand %p2583_p8, %p2577_p3 }
  0x2d   : > { %2587 = shalt.err (!%p2584_p0)
}
  0x2e   : > { %s2773_s6 = smov 192   ;;  %s2774_s9 = smov 64  }
  0x2f   : > { %s2775_s12 = smov 4   ;;  %s1995_s14 = sshll.u32 %s2854_s27, 7 }
  0x30   : > { %2357 = dma.hbm_to_vmem [thread:$0]  (!%p2863_p5), %s2861_s7, 15360, %s2867_s10, %s2871_s11, %s2773_s6, %s2774_s9, %s2775_s12  }
  0x31   : > { %s2148_s15 = sshll.u32 %s2770_s21, 11  ;;  %s3274_s3 = sld [smem:[#allocation20_spill]] }
  0x32   : > { %s246_s24 = scalar_lea.vmem [#allocation8], %s1995_s14  ;;  %s2911_s29 = scalar_lea.sflag [#allocation9], %s205_s26 }
  0x33   : > { %s253_s28 = sshll.u32 %s246_s24, 4  ;;  %s2907_s28 = int_to_ptr.vmem [resolvable:$true] %s253_s28 }
  0x37   : > { %s2905_s23 = scalar_lea.hbm %s3274_s3, %s2148_s15  ;;  %s2593_s6 = scalar_lea.hbm %s3274_s3, 6144 }
  0x38   : > { %s2588_s30 = scalar_lea.hbm %s2905_s23, 2048  ;;  %p2594_p11 = scmp.lt.s32.totalorder %s2905_s23, %s3274_s3 }
  0x39   : > { %p2589_p0 = scmp.ne.s32.totalorder %s2905_s23, %s2588_s30  ;;  %p2595_p12 = scmp.lt.s32.totalorder %s2593_s6, %s2588_s30 }
  0x3b   : > { %p2591_p9 = pnand %p2589_p0, %p2877_p7  ;;  %p2596_p13 = por %p2595_p12, %p2594_p11 }
  0x3d   : > { %p2592_p10 = pneg %p2591_p9 }
  0x3f   : > { %p2597_p1 = pnand %p2596_p13, %p2592_p10 }
  0x41   : > { %2600 = shalt.err (!%p2597_p1)
}
  0x42   : > { %s2601_s26 = scalar_lea.vmem %s2907_s28, 2048  ;;  %s2776_s14 = smov [#allocation8]  }
  0x43   : > { %p2602_p2 = scmp.ne.s32.totalorder %s2907_s28, %s2601_s26  ;;  %s2606_s15 = sshll.u32 %s2776_s14, 4  ;;  %s2607_s15 = int_to_ptr.vmem [resolvable:$false] %s2606_s15 }
  0x44   : > { %s2608_s16 = scalar_lea.vmem %s2607_s15, 4096  ;;  %p2609_p6 = scmp.lt.s32.totalorder %s2907_s28, %s2607_s15 }
  0x45   : > { %p2604_p3 = pnand %p2602_p2, %p2877_p7  ;;  %p2610_p8 = scmp.lt.s32.totalorder %s2608_s16, %s2601_s26 }
  0x47   : > { %p2605_p4 = pneg %p2604_p3  ;;  %p2611_p0 = por %p2610_p8, %p2609_p6 }
  0x49   : > { %p2612_p9 = pnand %p2611_p0, %p2605_p4 }
  0x4b   : > { %2615 = shalt.err (!%p2612_p9)
}
  0x4c   : > { %s2777_s17 = smov 128   ;;  %s2778_s24 = smov 8  }
  0x4d   : > { %2363 = dma.hbm_to_vmem [thread:$0]  (!%p2863_p5), %s2905_s23, 2048, %s2907_s28, %s2911_s29, %s2777_s17, %s2777_s17, %s2778_s24  }
  0x4e   : > { %s2935_s30 = sadd.s32 4294967295, %s2770_s21   ;;  %s1989_s7 = sadd.s32 4294967294, %s2770_s21  }
  0x4f   : > { %p66_p10 = scmp.ne.s32.totalorder %s2762_s19, %s2758_s18  ;;  %p3258_p11 = scmp.eq.s32.totalorder %s2935_s30, 0 }
  0x50   : > { %p168_p12 = scmp.eq.s32.totalorder %s2935_s30, 2  ;;  %p174_p13 = scmp.eq.s32.totalorder %s1989_s7, 2 }
  0x51   : > { %p2944_p1 = por %p3258_p11, %p66_p10  ;;  %p1990_p2 = scmp.ge.s32.totalorder %s2770_s21, 1 }
  0x52   : > { %p3276_p3 = scmp.ne.s32.totalorder %s2766_s20, %s2762_s19  ;;  %p2956_p6 = por %p174_p13, %p66_p10 }
  0x53   : > { %s3275_s10 = scalar_select %p2944_p1, 1, 0 }
  0x54   : > { %p2952_p4 = por %p168_p12, %p3276_p3  ;;  %p181_p8 = scmp.lt.s32.totalorder %s2770_s21, 4 }
  0x55   : > { %s3278_s28 = scalar_select %p2956_p6, 1, 0 }
  0x56   : > { %s3277_s23 = scalar_select %p2952_p4, 1, 0 }
  0x57   : > { %p2961_p0 = pnand %p1990_p2, %p181_p8  ;;  %s2779_s9 = smov [#allocation2]  }
  0x58   : > { %s194_s12 = sshll.u32 %s2779_s9, 4  ;;  %s1994_s26 = sshll.u32 %s2770_s21, 4  ;;  %s2965_s12 = int_to_ptr.vmem [resolvable:$true] %s194_s12 }
  0x59   : > { %s3279_s6 = scalar_select %p2961_p0, 1, 0 }
  0x5a   : > { %p2350_p9 = pneg %p2961_p0  ;;  %s2973_s16 = scalar_lea.hbm %s3253_s2, %s1994_s26 }
  0x5b   : > { %s228_s17 = scalar_lea.vmem [#allocation7], %s2854_s27  ;;  %s2616_s9 = scalar_lea.hbm %s2973_s16, 16 }
  0x5c   : > { %s235_s24 = sshll.u32 %s228_s17, 4  ;;  %p2979_p10 = pnand %p2350_p9, %p3258_p11  ;;  %s236_s24 = int_to_ptr.vmem [resolvable:$true] %s235_s24 }
  0x5d   : > { %p2617_p12 = scmp.ne.s32.totalorder %s2973_s16, %s2616_s9  ;;  %s2621_s15 = scalar_lea.hbm %s3253_s2, 48 }
  0x5e   : > { %s3280_s1 = scalar_select %p2979_p10, 1, 0 }
  0x5f   : > { %p2619_p13 = pnand %p2617_p12, %p2877_p7  ;;  %p2622_p3 = scmp.lt.s32.totalorder %s2973_s16, %s3253_s2 }
  0x60   : > { %p2623_p8 = scmp.lt.s32.totalorder %s2621_s15, %s2616_s9 }
  0x61   : > { %p2620_p2 = pneg %p2619_p13 }
  0x62   : > { %p2624_p6 = por %p2623_p8, %p2622_p3 }
  0x64   : > { %p2625_p9 = pnand %p2624_p6, %p2620_p2 }
  0x66   : > { %2628 = shalt.err (!%p2625_p9)
}
  0x67   : > { %s2629_s17 = scalar_lea.vmem %s236_s24, 16  ;;  %s2780_s7 = smov [#allocation7]  }
  0x68   : > { %p2630_p11 = scmp.ne.s32.totalorder %s236_s24, %s2629_s17  ;;  %s2634_s20 = sshll.u32 %s2780_s7, 4  ;;  %s2635_s20 = int_to_ptr.vmem [resolvable:$false] %s2634_s20 }
  0x69   : > { %s2636_s22 = scalar_lea.vmem %s2635_s20, 32  ;;  %p2637_p12 = scmp.lt.s32.totalorder %s236_s24, %s2635_s20 }
  0x6a   : > { %p2632_p4 = pnand %p2630_p11, %p2877_p7  ;;  %p2638_p13 = scmp.lt.s32.totalorder %s2636_s22, %s2629_s17 }
  0x6c   : > { %p2633_p1 = pneg %p2632_p4  ;;  %p2639_p0 = por %p2638_p13, %p2637_p12 }
  0x6e   : > { %p2640_p10 = pnand %p2639_p0, %p2633_p1 }
  0x70   : > { %2643 = shalt.err (!%p2640_p10)
}
  0x71   : > { %2360 = dma.hbm_to_vmem [thread:$0]  (!%p2863_p5), %s2973_s16, 16, %s236_s24, %s2871_s11  }
  0x72   : > { %p3281_p11 = scmp.ne.s32.totalorder %s3280_s1, 0  ;;  %s2655_s3 = scalar_lea.vmem %s2965_s12, 1920 }
  0x73   : > { %p2656_p6 = scmp.ne.s32.totalorder %s2965_s12, %s2655_s3  ;;  %p2663_p8 = scmp.lt.s32.totalorder %s2965_s12, %s2965_s12 }
  0x74   : > { %p2646_p4 = pneg %p3281_p11  ;;  %p2664_p9 = scmp.lt.s32.totalorder %s2655_s3, %s2655_s3 }
  0x76   : > { %p2658_p2 = pnand %p2656_p6, %p2646_p4  ;;  %p2665_p1 = por %p2664_p9, %p2663_p8 }
  0x78   : > { %p2659_p3 = pneg %p2658_p2 }
  0x7a   : > { %p2666_p0 = pnand %p2665_p1, %p2659_p3 }
  0x7c   : > { %2669 = shalt.err (!%p2666_p0)
}
  0x7d   : > { %2353 = dma.hbm_to_vmem [thread:$0]  (!%p3281_p11), %s3251_s0, 1920, %s2965_s12, [#allocation3]  }
  0x7e   : > { %s2149_s25 = sshll.u32 %s2770_s21, 5  ;;  %s3282_s11 = sshll.u32 %s2854_s27, 1 }
  0x7f   : > { %s267_s16 = scalar_lea.vmem [#allocation10], %s3282_s11  ;;  %s273_s14 = scalar_lea.hbm %s3255_s4, %s2149_s25 }
  0x80   : > { %s275_s24 = sshll.u32 %s267_s16, 4  ;;  %s2670_s26 = scalar_lea.hbm %s273_s14, 32  ;;  %s276_s24 = int_to_ptr.vmem [resolvable:$true] %s275_s24 }
  0x81   : > { %p2671_p10 = scmp.ne.s32.totalorder %s273_s14, %s2670_s26  ;;  %s2675_s17 = scalar_lea.hbm %s3255_s4, 96 }
  0x82   : > { %p2676_p11 = scmp.lt.s32.totalorder %s273_s14, %s3255_s4  ;;  %p2677_p4 = scmp.lt.s32.totalorder %s2675_s17, %s2670_s26 }
  0x83   : > { %p2673_p12 = pnand %p2671_p10, %p2877_p7 }
  0x84   : > { %p2678_p6 = por %p2677_p4, %p2676_p11 }
  0x85   : > { %p2674_p13 = pneg %p2673_p12 }
  0x87   : > { %p2679_p2 = pnand %p2678_p6, %p2674_p13 }
  0x89   : > { %2682 = shalt.err (!%p2679_p2)
}
  0x8a   : > { %s2683_s27 = scalar_lea.vmem %s276_s24, 32  ;;  %s2781_s20 = smov [#allocation10]  }
  0x8b   : > { %p2684_p3 = scmp.ne.s32.totalorder %s276_s24, %s2683_s27  ;;  %s2688_s22 = sshll.u32 %s2781_s20, 4  ;;  %s2689_s22 = int_to_ptr.vmem [resolvable:$false] %s2688_s22 }
  0x8c   : > { %s2690_s25 = scalar_lea.vmem %s2689_s22, 64  ;;  %p2691_p1 = scmp.lt.s32.totalorder %s276_s24, %s2689_s22 }
  0x8d   : > { %p2686_p8 = pnand %p2684_p3, %p2877_p7  ;;  %p2692_p0 = scmp.lt.s32.totalorder %s2690_s25, %s2683_s27 }
  0x8f   : > { %p2687_p9 = pneg %p2686_p8  ;;  %p2693_p10 = por %p2692_p0, %p2691_p1 }
  0x91   : > { %p2694_p12 = pnand %p2693_p10, %p2687_p9 }
  0x93   : > { %2697 = shalt.err (!%p2694_p12)
}
  0x94   : > { %2366 = dma.hbm_to_vmem [thread:$0]  (!%p2863_p5), %s273_s14, 32, %s276_s24, %s2911_s29  }
  0x95   : > { %p3283_p13 = scmp.ne.s32.totalorder %s3279_s6, 0 }
  0x96   : > { %p3284_p11 = scmp.eq.s32.totalorder (!%p3283_p13), %s2935_s30, 0 }
  0x97   : > { %284 = sbr.rel (%p3283_p13) target bundleno = 711 (0x2c7), region = 40 }
  0x9c   : > { %2741 = dma.done.wait (%p3284_p11), [#allocation3], 1920   ;;  %p3285_p7 = pmov %p3284_p11 }
  0x9d   : > { %s290_s13 = sand.u32 1, %s2935_s30   ;;  %s3039_s11 = sand.u32 1, %s2762_s19  }
  0x9e   : > { %2743 = vsyncadd (%p3285_p7), [#allocation3], 4294965376  ;;  %s2335_s16 = smul.u32 960, %s3039_s11  ;;  %s291_s8 = scalar_lea.sflag [#allocation6], %s290_s13 }
  0x9f   : > { %p3286_p5 = scmp.ne.s32.totalorder %s3275_s10, 0 }
  0xa0   : > { %s3042_s7 = scalar_lea.vmem [#allocation5], %s2335_s16 }
  0xa1   : > { %2745 = dma.done.wait (%p3286_p5), %s291_s8, 15376  }
  0xa2   : > { %2747 = vsyncadd (%p3286_p5), %s291_s8, 4294951920  ;;  %s2003_s29 = sshll.u32 %s3039_s11, 7  ;;  %s302_s6 = scalar_lea.vmem [#allocation7], %s3039_s11 }
  0xa3   : > { %s308_s24 = scalar_lea.sflag [#allocation9], %s290_s13  ;;  %s3050_s9 = scalar_lea.vmem [#allocation8], %s2003_s29 }
  0xa4   : > { %2749 = dma.done.wait (%p3286_p5), %s308_s24, 2080  }
  0xa5   : > { %2751 = vsyncadd (%p3286_p5), %s308_s24, 4294965216  ;;  %v2416_v0 = vld [vmem:[%s3042_s7 + $0x78] sm:$0xff]   ;;  %v2420_v4 = vld [vmem:[%s3042_s7 + $0x70] sm:$0xff]   ;;  %vm2783_vm0 = vmmov 0   ;;  %s2004_s10 = sshll.u32 %s3039_s11, 1  ;;  %s2005_s14 = sshll.u32 %s3039_s11, 4 }
  0xa6   : > { %v2417_v1 = vld [vmem:[%s3042_s7 + $0xf8] sm:$0xff]   ;;  %2151 = vmatprep.subr.bf16.mxu0 %v2416_v0  ;;  %v2421_v5 = vld [vmem:[%s3042_s7 + $0xf0] sm:$0xff]   ;;  %v2424_v8 = vld [vmem:[%s3042_s7 + $0x68] sm:$0xff]   ;;  %s320_s26 = scalar_lea.vmem [#allocation10], %s2004_s10  ;;  %s2150_s1 = sshll.u32 %s2935_s30, 8 }
  0xa7   : > { %v2418_v2 = vld [vmem:[%s3042_s7 + $0x38] sm:$0xff]   ;;  %2173 = vmatprep.subr.bf16.mxu1 %v2417_v1  ;;  %v2422_v6 = vld [vmem:[%s3042_s7 + $0x30] sm:$0xff]   ;;  %v2425_v9 = vld [vmem:[%s3042_s7 + $0xe8] sm:$0xff]   ;;  %s360_s15 = scalar_lea.vmem [#allocation11], %s2005_s14  ;;  %s3209_s27 = scalar_lea.hbm %s3256_s5, %s2150_s1 }
  0xa8   : > { %v2419_v3 = vld [vmem:[%s3042_s7 + $0xb8] sm:$0xff]   ;;  %2152 = vmatpush3.bf16.msra.mxu0 %v2418_v2  ;;  %v2423_v7 = vld [vmem:[%s3042_s7 + $0xb0] sm:$0xff]   ;;  %v2426_v10 = vld [vmem:[%s3042_s7 + $0x28] sm:$0xff]   ;;  %s1847_s17 = sshll.u32 %s360_s15, 4  ;;  %s1833_s30 = scalar_lea.sflag [#allocation4], %s3039_s11  ;;  %s3211_s17 = int_to_ptr.vmem [resolvable:$true] %s1847_s17 }
  0xa9   : > { %2174 = vmatpush3.bf16.msra.mxu1 %v2419_v3  ;;  %2153 = vmatprep.subr.bf16.mxu0 %v2420_v4  ;;  %v2427_v11 = vld [vmem:[%s3042_s7 + $0xa8] sm:$0xff]   ;;  %v2428_v12 = vld [vmem:[%s3042_s7 + $0x60] sm:$0xff]   ;;  %v2432_v16 = vld [vmem:[%s3042_s7 + $0x58] sm:$0xff]   ;;  %s2698_s20 = scalar_lea.vmem %s3211_s17, 256  ;;  %p3287_p6 = scmp.ne.s32.totalorder %s3277_s23, 0 }
  0xaa   : > { %2175 = vmatprep.subr.bf16.mxu1 %v2421_v5  ;;  %v2429_v13 = vld [vmem:[%s3042_s7 + $0xe0] sm:$0xff]   ;;  %v2433_v17 = vld [vmem:[%s3042_s7 + $0xd8] sm:$0xff]   ;;  %v2436_v20 = vld [vmem:[%s3042_s7 + $0x50] sm:$0xff]   ;;  %p2699_p4 = scmp.ne.s32.totalorder %s3211_s17, %s2698_s20  ;;  %s2785_s22 = smov [#allocation11]  }
  0xab   : > { %v2430_v14 = vld [vmem:[%s3042_s7 + $0x20] sm:$0xff]   ;;  %v2434_v18 = vld [vmem:[%s3042_s7 + $0x18] sm:$0xff]   ;;  %v2437_v21 = vld [vmem:[%s3042_s7 + $0xd0] sm:$0xff]   ;;  %s2702_s25 = sshll.u32 %s2785_s22, 4  ;;  %s2703_s25 = int_to_ptr.vmem [resolvable:$false] %s2702_s25 }
  0xac   : > { %2154 = vmatpush3.bf16.msra.mxu0 %v2422_v6  ;;  %v2431_v15 = vld [vmem:[%s3042_s7 + $0xa0] sm:$0xff]   ;;  %v2435_v19 = vld [vmem:[%s3042_s7 + $0x98] sm:$0xff]   ;;  %v2438_v22 = vld [vmem:[%s3042_s7 + $0x10] sm:$0xff]   ;;  %p2700_p2 = pnand %p2699_p4, %p3287_p6  ;;  %s2704_s13 = scalar_lea.vmem %s2703_s25, 512 }
  0xad   : > { %2176 = vmatpush3.bf16.msra.mxu1 %v2423_v7  ;;  %2155 = vmatprep.subr.bf16.mxu0 %v2424_v8  ;;  %v2439_v23 = vld [vmem:[%s3042_s7 + $0x90] sm:$0xff]   ;;  %v2440_v24 = vld [vmem:[%s3042_s7 + $0x48] sm:$0xff]   ;;  %v2444_v28 = vld [vmem:[%s3042_s7 + $0x40] sm:$0xff]   ;;  %p2705_p8 = scmp.lt.s32.totalorder %s3211_s17, %s2703_s25  ;;  %p2706_p9 = scmp.lt.s32.totalorder %s2704_s13, %s2698_s20 }
  0xae   : > { %2177 = vmatprep.subr.bf16.mxu1 %v2425_v9  ;;  %v2441_v25 = vld [vmem:[%s3042_s7 + $0xc8] sm:$0xff]   ;;  %v2445_v29 = vld [vmem:[%s3042_s7 + $0xc0] sm:$0xff]   ;;  %v363_v32 = vld [vmem:[#allocation2 + $0x8] sm:$0xff]  ;;  %p2701_p3 = pneg %p2700_p2 }
  0xaf   : > { %v2442_v26 = vld [vmem:[%s3042_s7 + $0x8] sm:$0xff]   ;;  %v2446_v30 = vld [vmem:[%s3042_s7] sm:$0xff]   ;;  %v378_v35 = vpack.c.bf16 %v363_v32, %v363_v32  ;;  %v2448_v38 = vld [vmem:[%s3042_s7 + $0x178] sm:$0xff]   ;;  %p2707_p1 = por %p2706_p9, %p2705_p8 }
  0xb0   : > { %2156 = vmatpush3.bf16.msra.mxu0 %v2426_v10  ;;  %v2443_v27 = vld [vmem:[%s3042_s7 + $0x88] sm:$0xff]   ;;  %v2447_v31 = vld [vmem:[%s3042_s7 + $0x80] sm:$0xff]   ;;  %v2449_v39 = vld [vmem:[%s3042_s7 + $0x1f8] sm:$0xff]  }
  0xb1   : > { %2178 = vmatpush3.bf16.msra.mxu1 %v2427_v11  ;;  %2157 = vmatprep.subr.bf16.mxu0 %v2428_v12  ;;  %v362_v33 = vld [vmem:[#allocation2] sm:$0xff]  ;;  %v365_v34 = vld [vmem:[#allocation2 + $0x18] sm:$0xff]  ;;  %v364_v40 = vld [vmem:[#allocation2 + $0x10] sm:$0xff]  ;;  %p2708_p0 = pnand %p2707_p1, %p2701_p3 }
  0xb2   : > { %2179 = vmatprep.subr.bf16.mxu1 %v2429_v13  ;;  %v377_v36 = vpack.c.bf16 %v362_v33, %v362_v33  ;;  %v380_v37 = vpack.c.bf16 %v365_v34, %v365_v34  ;;  %1391 = vmatprep.mubr.bf16.mxu0 %v378_v35  ;;  %v379_v41 = vpack.c.bf16 %v364_v40, %v364_v40  ;;  %v2450_v42 = vld [vmem:[%s3042_s7 + $0x138] sm:$0xff]   ;;  %v2452_v44 = vld [vmem:[%s3042_s7 + $0x170] sm:$0xff]   ;;  %v2456_v48 = vld [vmem:[%s3042_s7 + $0x168] sm:$0xff]  }
  0xb3   : > { %v2451_v43 = vld [vmem:[%s3042_s7 + $0x1b8] sm:$0xff]   ;;  %v2453_v45 = vld [vmem:[%s3042_s7 + $0x1f0] sm:$0xff]   ;;  %v2457_v49 = vld [vmem:[%s3042_s7 + $0x1e8] sm:$0xff]  }
  0xb4   : > { %2158 = vmatpush3.bf16.msra.mxu0 %v2430_v14  ;;  %1431 = vmatprep.mubr.bf16.mxu1 %v380_v37  ;;  %v2454_v46 = vld [vmem:[%s3042_s7 + $0x130] sm:$0xff]   ;;  %v2458_v50 = vld [vmem:[%s3042_s7 + $0x128] sm:$0xff]   ;;  %v2460_v52 = vld [vmem:[%s3042_s7 + $0x160] sm:$0xff]  }
  0xb5   : > { %2180 = vmatpush3.bf16.msra.mxu1 %v2431_v15  ;;  %2159 = vmatprep.subr.bf16.mxu0 %v2432_v16  ;;  %v2455_v47 = vld [vmem:[%s3042_s7 + $0x1b0] sm:$0xff]   ;;  %v2459_v51 = vld [vmem:[%s3042_s7 + $0x1a8] sm:$0xff]   ;;  %v2461_v53 = vld [vmem:[%s3042_s7 + $0x1e0] sm:$0xff]  }
  0xb6   : > { %2181 = vmatprep.subr.bf16.mxu1 %v2433_v17  ;;  %v2462_v54 = vld [vmem:[%s3042_s7 + $0x120] sm:$0xff]   ;;  %v2464_v56 = vld [vmem:[%s3042_s7 + $0x158] sm:$0xff]   ;;  %v2468_v60 = vld [vmem:[%s3042_s7 + $0x150] sm:$0xff]  }
  0xb7   : > { %v2463_v55 = vld [vmem:[%s3042_s7 + $0x1a0] sm:$0xff]   ;;  %v2465_v57 = vld [vmem:[%s3042_s7 + $0x1d8] sm:$0xff]   ;;  %v2469_v61 = vld [vmem:[%s3042_s7 + $0x1d0] sm:$0xff]  }
  0xb8   : > { %2160 = vmatpush3.bf16.msra.mxu0 %v2434_v18  ;;  %v2466_v58 = vld [vmem:[%s3042_s7 + $0x118] sm:$0xff]   ;;  %v2470_v62 = vld [vmem:[%s3042_s7 + $0x110] sm:$0xff]   ;;  %v2472_v0 = vld [vmem:[%s3042_s7 + $0x148] sm:$0xff]  }
  0xb9   : > { %2182 = vmatpush3.bf16.msra.mxu1 %v2435_v19  ;;  %2161 = vmatprep.subr.bf16.mxu0 %v2436_v20  ;;  %v2467_v59 = vld [vmem:[%s3042_s7 + $0x198] sm:$0xff]   ;;  %v2471_v63 = vld [vmem:[%s3042_s7 + $0x190] sm:$0xff]   ;;  %v2473_v1 = vld [vmem:[%s3042_s7 + $0x1c8] sm:$0xff]  }
  0xba   : > { %2183 = vmatprep.subr.bf16.mxu1 %v2437_v21  ;;  %v2474_v2 = vld [vmem:[%s3042_s7 + $0x108] sm:$0xff]   ;;  %v2476_v4 = vld [vmem:[%s3042_s7 + $0x140] sm:$0xff]   ;;  %v367_v8 = vld [vmem:[#allocation2 + $0x28] sm:$0xff] }
  0xbb   : > { %v2475_v3 = vld [vmem:[%s3042_s7 + $0x188] sm:$0xff]   ;;  %v2477_v5 = vld [vmem:[%s3042_s7 + $0x1c0] sm:$0xff]   ;;  %v382_v10 = vpack.c.bf16 %v367_v8, %v367_v8  ;;  %v2480_v14 = vld [vmem:[%s3042_s7 + $0x278] sm:$0xff]  }
  0xbc   : > { %2162 = vmatpush3.bf16.msra.mxu0 %v2438_v22  ;;  %v2478_v6 = vld [vmem:[%s3042_s7 + $0x100] sm:$0xff]   ;;  %v366_v9 = vld [vmem:[#allocation2 + $0x20] sm:$0xff]  ;;  %v2481_v15 = vld [vmem:[%s3042_s7 + $0x2f8] sm:$0xff]  }
  0xbd   : > { %2184 = vmatpush3.bf16.msra.mxu1 %v2439_v23  ;;  %2163 = vmatprep.subr.bf16.mxu0 %v2440_v24  ;;  %v2479_v7 = vld [vmem:[%s3042_s7 + $0x180] sm:$0xff]   ;;  %v381_v11 = vpack.c.bf16 %v366_v9, %v366_v9  ;;  %v368_v16 = vld [vmem:[#allocation2 + $0x30] sm:$0xff]  ;;  %v2484_v20 = vld [vmem:[%s3042_s7 + $0x270] sm:$0xff]  }
  0xbe   : > { %2185 = vmatprep.subr.bf16.mxu1 %v2441_v25  ;;  %v369_v12 = vld [vmem:[#allocation2 + $0x38] sm:$0xff]  ;;  %v383_v17 = vpack.c.bf16 %v368_v16, %v368_v16  ;;  %v2482_v18 = vld [vmem:[%s3042_s7 + $0x238] sm:$0xff]   ;;  %v2485_v21 = vld [vmem:[%s3042_s7 + $0x2f0] sm:$0xff]  }
  0xbf   : > { %v384_v13 = vpack.c.bf16 %v369_v12, %v369_v12  ;;  %v2483_v19 = vld [vmem:[%s3042_s7 + $0x2b8] sm:$0xff]   ;;  %v2486_v22 = vld [vmem:[%s3042_s7 + $0x230] sm:$0xff]   ;;  %v2488_v24 = vld [vmem:[%s3042_s7 + $0x268] sm:$0xff]  }
  0xc0   : > { %2164 = vmatpush3.bf16.msra.mxu0 %v2442_v26  ;;  %v2487_v23 = vld [vmem:[%s3042_s7 + $0x2b0] sm:$0xff]   ;;  %v2489_v25 = vld [vmem:[%s3042_s7 + $0x2e8] sm:$0xff]   ;;  %v2496_v32 = vld [vmem:[%s3042_s7 + $0x258] sm:$0xff]  }
  0xc1   : > { %2186 = vmatpush3.bf16.msra.mxu1 %v2443_v27  ;;  %2165 = vmatprep.subr.bf16.mxu0 %v2444_v28  ;;  %v2490_v26 = vld [vmem:[%s3042_s7 + $0x228] sm:$0xff]   ;;  %v2492_v28 = vld [vmem:[%s3042_s7 + $0x260] sm:$0xff]   ;;  %v2497_v33 = vld [vmem:[%s3042_s7 + $0x2d8] sm:$0xff]  }
  0xc2   : > { %2187 = vmatprep.subr.bf16.mxu1 %v2445_v29  ;;  %v2491_v27 = vld [vmem:[%s3042_s7 + $0x2a8] sm:$0xff]   ;;  %v2493_v29 = vld [vmem:[%s3042_s7 + $0x2e0] sm:$0xff]   ;;  %v2498_v34 = vld [vmem:[%s3042_s7 + $0x218] sm:$0xff]  }
  0xc3   : > { %v2499_v35 = vld [vmem:[%s3042_s7 + $0x298] sm:$0xff]   ;;  %v2501_v37 = vld [vmem:[%s3042_s7 + $0x2d0] sm:$0xff]   ;;  %v2504_v40 = vld [vmem:[%s3042_s7 + $0x248] sm:$0xff]  }
  0xc4   : > { %2166 = vmatpush3.bf16.msra.mxu0 %v2446_v30  ;;  %v2494_v30 = vld [vmem:[%s3042_s7 + $0x220] sm:$0xff]   ;;  %v2527_v8 = vld [vmem:[%s3042_s7 + $0x350] sm:$0xff]   ;;  %v2531_v12 = vld [vmem:[%s3042_s7 + $0x308] sm:$0xff]  }
  0xc5   : > { %2188 = vmatpush3.bf16.msra.mxu1 %v2447_v31  ;;  %2195 = vmatprep.subr.bf16.mxu0 %v2448_v38  ;;  %v2495_v31 = vld [vmem:[%s3042_s7 + $0x2a0] sm:$0xff]   ;;  %v2502_v38 = vld [vmem:[%s3042_s7 + $0x210] sm:$0xff]  }
  0xc6   : > { %2217 = vmatprep.subr.bf16.mxu1 %v2449_v39  ;;  %v2503_v39 = vld [vmem:[%s3042_s7 + $0x290] sm:$0xff]  }
  0xc7   : > { %1392 = vmatmul.mubr.bf16.vlgmr.msra.gmra.mxu0 %v377_v36  ;;  %v2500_v36 = vld [vmem:[%s3042_s7 + $0x250] sm:$0xff]  }
  0xc8   : > { %1432 = vmatmul.mubr.bf16.vlgmr.msra.gmra.mxu1 %v379_v41  ;;  %2196 = vmatpush3.bf16.msra.mxu0 %v2450_v42  ;;  %v2505_v41 = vld [vmem:[%s3042_s7 + $0x2c8] sm:$0xff]   ;;  %v2528_v9 = vld [vmem:[%s3042_s7 + $0x310] sm:$0xff]  }
  0xc9   : > { %2218 = vmatpush3.bf16.msra.mxu1 %v2451_v43  ;;  %2197 = vmatprep.subr.bf16.mxu0 %v2452_v44  ;;  %v2506_v42 = vld [vmem:[%s3042_s7 + $0x208] sm:$0xff]   ;;  %v2508_v44 = vld [vmem:[%s3042_s7 + $0x240] sm:$0xff]  }
  0xca   : > { %2219 = vmatprep.subr.bf16.mxu1 %v2453_v45  ;;  %1471 = vmatprep.mubr.bf16.mxu0 %v382_v10  ;;  %v2507_v43 = vld [vmem:[%s3042_s7 + $0x288] sm:$0xff]   ;;  %v2509_v45 = vld [vmem:[%s3042_s7 + $0x2c0] sm:$0xff]   ;;  %v2529_v10 = vld [vmem:[%s3042_s7 + $0x390] sm:$0xff]  }
  0xcb   : > { %1511 = vmatprep.mubr.bf16.mxu1 %v384_v13  ;;  %v2532_v13 = vld [vmem:[%s3042_s7 + $0x388] sm:$0xff]  }
  0xcc   : > { %2198 = vmatpush3.bf16.msra.mxu0 %v2454_v46  ;;  %v2510_v46 = vld [vmem:[%s3042_s7 + $0x200] sm:$0xff]  }
  0xcd   : > { %2220 = vmatpush3.bf16.msra.mxu1 %v2455_v47  ;;  %2199 = vmatprep.subr.bf16.mxu0 %v2456_v48  ;;  %v2511_v47 = vld [vmem:[%s3042_s7 + $0x280] sm:$0xff]   ;;  %v371_v48 = vld [vmem:[#allocation2 + $0x48] sm:$0xff] }
  0xce   : > { %2221 = vmatprep.subr.bf16.mxu1 %v2457_v49  ;;  %v386_v49 = vpack.c.bf16 %v371_v48, %v371_v48 }
  0xd0   : > { %2200 = vmatpush3.bf16.msra.mxu0 %v2458_v50  ;;  %v370_v50 = vld [vmem:[#allocation2 + $0x40] sm:$0xff] }
  0xd1   : > { %2222 = vmatpush3.bf16.msra.mxu1 %v2459_v51  ;;  %2201 = vmatprep.subr.bf16.mxu0 %v2460_v52  ;;  %v373_v51 = vld [vmem:[#allocation2 + $0x58] sm:$0xff]  ;;  %v385_v52 = vpack.c.bf16 %v370_v50, %v370_v50 }
  0xd2   : > { %2223 = vmatprep.subr.bf16.mxu1 %v2461_v53  ;;  %v388_v53 = vpack.c.bf16 %v373_v51, %v373_v51 }
  0xd4   : > { %2202 = vmatpush3.bf16.msra.mxu0 %v2462_v54  ;;  %v2512_v54 = vld [vmem:[%s3042_s7 + $0x378] sm:$0xff]  }
  0xd5   : > { %2224 = vmatpush3.bf16.msra.mxu1 %v2463_v55  ;;  %2203 = vmatprep.subr.bf16.mxu0 %v2464_v56  ;;  %v372_v55 = vld [vmem:[#allocation2 + $0x50] sm:$0xff]  ;;  %v2782_v56 = vmov 0.0  }
  0xd6   : > { %2225 = vmatprep.subr.bf16.mxu1 %v2465_v57  ;;  %v387_v57 = vpack.c.bf16 %v372_v55, %v372_v55 }
  0xd8   : > { %2204 = vmatpush3.bf16.msra.mxu0 %v2466_v58  ;;  %v2513_v58 = vld [vmem:[%s3042_s7 + $0x338] sm:$0xff]  }
  0xd9   : > { %2226 = vmatpush3.bf16.msra.mxu1 %v2467_v59  ;;  %2205 = vmatprep.subr.bf16.mxu0 %v2468_v60  ;;  %v2514_v59 = vld [vmem:[%s3042_s7 + $0x3b8] sm:$0xff]   ;;  %v2515_v60 = vld [vmem:[%s3042_s7 + $0x370] sm:$0xff]  }
  0xda   : > { %2227 = vmatprep.subr.bf16.mxu1 %v2469_v61  ;;  %v2516_v61 = vld [vmem:[%s3042_s7 + $0x330] sm:$0xff]  }
  0xdc   : > { %2206 = vmatpush3.bf16.msra.mxu0 %v2470_v62  ;;  %v2517_v62 = vld [vmem:[%s3042_s7 + $0x3b0] sm:$0xff]  }
  0xdd   : > { %2228 = vmatpush3.bf16.msra.mxu1 %v2471_v63  ;;  %2207 = vmatprep.subr.bf16.mxu0 %v2472_v0  ;;  %v2518_v63 = vld [vmem:[%s3042_s7 + $0x368] sm:$0xff]  }
  0xde   : > { %2229 = vmatprep.subr.bf16.mxu1 %v2473_v1  ;;  %v2519_v0 = vld [vmem:[%s3042_s7 + $0x328] sm:$0xff]  }
  0xdf   : > { %v2520_v1 = vld [vmem:[%s3042_s7 + $0x3a8] sm:$0xff]  }
  0xe0   : > { %2208 = vmatpush3.bf16.msra.mxu0 %v2474_v2  ;;  %v2521_v2 = vld [vmem:[%s3042_s7 + $0x360] sm:$0xff]  }
  0xe1   : > { %2230 = vmatpush3.bf16.msra.mxu1 %v2475_v3  ;;  %2209 = vmatprep.subr.bf16.mxu0 %v2476_v4  ;;  %v2522_v3 = vld [vmem:[%s3042_s7 + $0x320] sm:$0xff]  }
  0xe2   : > { %2231 = vmatprep.subr.bf16.mxu1 %v2477_v5  ;;  %v2523_v4 = vld [vmem:[%s3042_s7 + $0x3a0] sm:$0xff]   ;;  %v2524_v5 = vld [vmem:[%s3042_s7 + $0x358] sm:$0xff]  }
  0xe4   : > { %2210 = vmatpush3.bf16.msra.mxu0 %v2478_v6  ;;  %v2525_v6 = vld [vmem:[%s3042_s7 + $0x318] sm:$0xff]  }
  0xe5   : > { %2232 = vmatpush3.bf16.msra.mxu1 %v2479_v7  ;;  %2239 = vmatprep.subr.bf16.mxu0 %v2480_v14  ;;  %v2526_v7 = vld [vmem:[%s3042_s7 + $0x398] sm:$0xff]   ;;  %v375_v14 = vld [vmem:[#allocation2 + $0x68] sm:$0xff] }
  0xe6   : > { %2261 = vmatprep.subr.bf16.mxu1 %v2481_v15  ;;  %v2533_v15 = vld [vmem:[%s3042_s7 + $0x340] sm:$0xff]   ;;  %v390_v16 = vpack.c.bf16 %v375_v14, %v375_v14 }
  0xe7   : > { %1472 = vmatmul.mubr.bf16.vlgmr.msra.gmra.mxu0 %v381_v11  ;;  %v2530_v11 = vld [vmem:[%s3042_s7 + $0x348] sm:$0xff]  }
  0xe8   : > { %1512 = vmatmul.mubr.bf16.vlgmr.msra.gmra.mxu1 %v383_v17  ;;  %2240 = vmatpush3.bf16.msra.mxu0 %v2482_v18  ;;  %v2534_v17 = vld [vmem:[%s3042_s7 + $0x300] sm:$0xff]  }
  0xe9   : > { %2262 = vmatpush3.bf16.msra.mxu1 %v2483_v19  ;;  %2241 = vmatprep.subr.bf16.mxu0 %v2484_v20  ;;  %v2535_v18 = vld [vmem:[%s3042_s7 + $0x380] sm:$0xff]   ;;  %v374_v19 = vld [vmem:[#allocation2 + $0x60] sm:$0xff]  ;;  %v376_v20 = vld [vmem:[#allocation2 + $0x70] sm:$0xff] }
  0xea   : > { %2263 = vmatprep.subr.bf16.mxu1 %v2485_v21  ;;  %1551 = vmatprep.mubr.bf16.mxu0 %v386_v49  ;;  %v389_v21 = vpack.c.bf16 %v374_v19, %v374_v19 }
  0xeb   : > { %1591 = vmatprep.mubr.bf16.mxu1 %v388_v53 }
  0xec   : > { %2242 = vmatpush3.bf16.msra.mxu0 %v2486_v22  ;;  %v391_v22 = vpack.c.bf16 %v376_v20, %v376_v20 }
  0xed   : > { %2264 = vmatpush3.bf16.msra.mxu1 %v2487_v23  ;;  %2243 = vmatprep.subr.bf16.mxu0 %v2488_v24  ;;  %v2536_v23 = vld [vmem:[%s3050_s9 + $0x70] ss:$8 sps:$4 sm:$0xff]   ;;  %v2538_v24 = vld [vmem:[%s3050_s9 + $0x74] ss:$8 sps:$4 sm:$0xff]  }
  0xee   : > { %2265 = vmatprep.subr.bf16.mxu1 %v2489_v25  ;;  %v2541_v25 = vld [vmem:[%s3050_s9 + $0x64] ss:$8 sps:$4 sm:$0xff]  }
  0xf0   : > { %2244 = vmatpush3.bf16.msra.mxu0 %v2490_v26  ;;  %v2539_v26 = vld [vmem:[%s3050_s9 + $0x60] ss:$8 sps:$4 sm:$0xff]  }
  0xf1   : > { %2266 = vmatpush3.bf16.msra.mxu1 %v2491_v27  ;;  %2245 = vmatprep.subr.bf16.mxu0 %v2492_v28  ;;  %v2544_v27 = vld [vmem:[%s3050_s9 + $0x54] ss:$8 sps:$4 sm:$0xff]   ;;  %v2542_v28 = vld [vmem:[%s3050_s9 + $0x50] ss:$8 sps:$4 sm:$0xff]  }
  0xf2   : > { %2267 = vmatprep.subr.bf16.mxu1 %v2493_v29  ;;  %v2547_v29 = vld [vmem:[%s3050_s9 + $0x44] ss:$8 sps:$4 sm:$0xff]  }
  0xf4   : > { %2246 = vmatpush3.bf16.msra.mxu0 %v2494_v30  ;;  %v2545_v30 = vld [vmem:[%s3050_s9 + $0x40] ss:$8 sps:$4 sm:$0xff]  }
  0xf5   : > { %2268 = vmatpush3.bf16.msra.mxu1 %v2495_v31  ;;  %2247 = vmatprep.subr.bf16.mxu0 %v2496_v32  ;;  %v2550_v31 = vld [vmem:[%s3050_s9 + $0x34] ss:$8 sps:$4 sm:$0xff]   ;;  %v2548_v32 = vld [vmem:[%s3050_s9 + $0x30] ss:$8 sps:$4 sm:$0xff]  }
  0xf6   : > { %2269 = vmatprep.subr.bf16.mxu1 %v2497_v33  ;;  %v2553_v33 = vld [vmem:[%s3050_s9 + $0x24] ss:$8 sps:$4 sm:$0xff]  }
  0xf8   : > { %2248 = vmatpush3.bf16.msra.mxu0 %v2498_v34  ;;  %v2551_v34 = vld [vmem:[%s3050_s9 + $0x20] ss:$8 sps:$4 sm:$0xff]  }
  0xf9   : > { %2270 = vmatpush3.bf16.msra.mxu1 %v2499_v35  ;;  %2249 = vmatprep.subr.bf16.mxu0 %v2500_v36  ;;  %v2556_v35 = vld [vmem:[%s3050_s9 + $0x14] ss:$8 sps:$4 sm:$0xff]   ;;  %v2554_v36 = vld [vmem:[%s3050_s9 + $0x10] ss:$8 sps:$4 sm:$0xff]  }
  0xfa   : > { %2271 = vmatprep.subr.bf16.mxu1 %v2501_v37  ;;  %v2559_v37 = vld [vmem:[%s3050_s9 + $0x4] ss:$8 sps:$4 sm:$0xff]  }
  0xfc   : > { %2250 = vmatpush3.bf16.msra.mxu0 %v2502_v38  ;;  %v2557_v38 = vld [vmem:[%s3050_s9] ss:$8 sps:$4 sm:$0xff]  }
  0xfd   : > { %2272 = vmatpush3.bf16.msra.mxu1 %v2503_v39  ;;  %2251 = vmatprep.subr.bf16.mxu0 %v2504_v40  ;;  %v2784_v39 = vmov 0  }
  0xfe   : > { %2273 = vmatprep.subr.bf16.mxu1 %v2505_v41 }
 0x100   : > { %2252 = vmatpush3.bf16.msra.mxu0 %v2506_v42  ;;  %v2006_v42 = vld [vmem:[%s302_s6] ss:$0 sm:$0xff] }
 0x101   : > { %2274 = vmatpush3.bf16.msra.mxu1 %v2507_v43  ;;  %2253 = vmatprep.subr.bf16.mxu0 %v2508_v44 }
 0x102   : > { %2275 = vmatprep.subr.bf16.mxu1 %v2509_v45 }
 0x104   : > { %2254 = vmatpush3.bf16.msra.mxu0 %v2510_v46 }
 0x105   : > { %2276 = vmatpush3.bf16.msra.mxu1 %v2511_v47  ;;  %2283 = vmatprep.subr.bf16.mxu0 %v2512_v54 }
 0x106   : > { %2314 = vmatprep.subr.bf16.mxu1 %v2782_v56 }
 0x107   : > { %1552 = vmatmul.mubr.bf16.vlgmr.msra.gmra.mxu0 %v385_v52 }
 0x108   : > { %1592 = vmatmul.mubr.bf16.vlgmr.msra.gmra.mxu1 %v387_v57  ;;  %2284 = vmatpush3.bf16.msra.mxu0 %v2513_v58 }
 0x109   : > { %2315 = vmatpush3.bf16.msra.mxu1 %v2514_v59  ;;  %2285 = vmatprep.subr.bf16.mxu0 %v2515_v60 }
 0x10a   : > { %2316 = vmatprep.subr.bf16.mxu1 %v2782_v56  ;;  %2330 = vmatprep.mubr.msk.bf16.mxu1 %vm2783_vm0, %v2782_v56 }
 0x10b   : > { %1631 = vmatprep.mubr.bf16.mxu0 %v390_v16 }
 0x10c   : > { %2286 = vmatpush3.bf16.msra.mxu0 %v2516_v61 }
 0x10d   : > { %2317 = vmatpush3.bf16.msra.mxu1 %v2517_v62  ;;  %2287 = vmatprep.subr.bf16.mxu0 %v2518_v63 }
 0x10e   : > { %2318 = vmatprep.subr.bf16.mxu1 %v2782_v56 }
 0x110   : > { %2288 = vmatpush3.bf16.msra.mxu0 %v2519_v0 }
 0x111   : > { %2319 = vmatpush3.bf16.msra.mxu1 %v2520_v1  ;;  %2289 = vmatprep.subr.bf16.mxu0 %v2521_v2 }
 0x112   : > { %2320 = vmatprep.subr.bf16.mxu1 %v2782_v56 }
 0x114   : > { %2290 = vmatpush3.bf16.msra.mxu0 %v2522_v3 }
 0x115   : > { %2321 = vmatpush3.bf16.msra.mxu1 %v2523_v4  ;;  %2291 = vmatprep.subr.bf16.mxu0 %v2524_v5 }
 0x116   : > { %2322 = vmatprep.subr.bf16.mxu1 %v2782_v56 }
 0x118   : > { %2292 = vmatpush3.bf16.msra.mxu0 %v2525_v6 }
 0x119   : > { %2323 = vmatpush3.bf16.msra.mxu1 %v2526_v7  ;;  %2293 = vmatprep.subr.bf16.mxu0 %v2527_v8 }
 0x11a   : > { %2324 = vmatprep.subr.bf16.mxu1 %v2782_v56 }
 0x11c   : > { %2294 = vmatpush3.bf16.msra.mxu0 %v2528_v9 }
 0x11d   : > { %2325 = vmatpush3.bf16.msra.mxu1 %v2529_v10  ;;  %2295 = vmatprep.subr.bf16.mxu0 %v2530_v11 }
 0x11e   : > { %2326 = vmatprep.subr.bf16.mxu1 %v2782_v56 }
 0x120   : > { %2296 = vmatpush3.bf16.msra.mxu0 %v2531_v12 }
 0x121   : > { %2327 = vmatpush3.bf16.msra.mxu1 %v2532_v13  ;;  %2297 = vmatprep.subr.bf16.mxu0 %v2533_v15 }
 0x122   : > { %2328 = vmatprep.subr.bf16.mxu1 %v2782_v56 }
 0x124   : > { %2298 = vmatpush3.bf16.msra.mxu0 %v2534_v17 }
 0x125   : > { %2329 = vmatpush3.bf16.msra.mxu1 %v2535_v18  ;;  %1789 = vmatprep.subr.bf16.mxu0 %v2538_v24 }
 0x127   : > { %1632 = vmatmul.mubr.bf16.vlgmr.msra.gmra.mxu0 %v389_v21 }
 0x128   : > { %2331 = vmatmul.mubr.bf16.vlgmr.msra.gmra.mxu1 %v391_v22  ;;  %1790 = vmatpush1.bf16.msra.mxu0 %v2536_v23 }
 0x129   : > { %1791 = vmatprep.subr.bf16.mxu0 %v2541_v25  ;;  %1821 = vmatprep.mubr.bf16.mxu0 %v2784_v39 }
 0x12c   : > { %1792 = vmatpush1.bf16.msra.mxu0 %v2539_v26  ;;  %v1699_v26 = vlaneseq }
 0x12d   : > { %1793 = vmatprep.subr.bf16.mxu0 %v2544_v27 }
 0x12e   : > { %v1700_v27 = vshrl.u32 %v1699_v26, 7 }
 0x130   : > { %1794 = vmatpush1.bf16.msra.mxu0 %v2542_v28  ;;  %v1701_v28 = vsub.s32 0, %v1700_v27 }
 0x131   : > { %1795 = vmatprep.subr.bf16.mxu0 %v2547_v29  ;;  %v1697_v29 = vld [vmem:[%s320_s26] sm:$0x3] }
 0x134   : > { %1796 = vmatpush1.bf16.msra.mxu0 %v2545_v30  ;;  %v1705_v30 = vsub.s32 1, %v1700_v27 }
 0x135   : > { %1797 = vmatprep.subr.bf16.mxu0 %v2550_v31  ;;  %v1702_v31 = vrot.slane %v1697_v29, %v1701_v28 }
 0x138   : > { %1798 = vmatpush1.bf16.msra.mxu0 %v2548_v32  ;;  %v1706_v32 = vrot.slane %v1697_v29, %v1705_v30 }
 0x139   : > { %1799 = vmatprep.subr.bf16.mxu0 %v2553_v33 }
 0x13c   : > { %1800 = vmatpush1.bf16.msra.mxu0 %v2551_v34 }
 0x13d   : > { %1801 = vmatprep.subr.bf16.mxu0 %v2556_v35 }
 0x140   : > { %1802 = vmatpush1.bf16.msra.mxu0 %v2554_v36 }
 0x141   : > { %1803 = vmatprep.subr.bf16.mxu0 %v2559_v37 }
 0x144   : > { %1804 = vmatpush1.bf16.msra.mxu0 %v2557_v38 }
 0x187   : > { %v2167_v40 = vpop.f32.mrf.mxu0 }
 0x188   : > { %v2189_v41 = vpop.f32.mrf.mxu1 }
 0x189   : > { %v2168_v43 = vpop.f32.mrf.mxu0 }
 0x18a   : > { %v2169_v44 = vadd.f32 %v2168_v43, %v2167_v40  ;;  %v2190_v45 = vpop.f32.mrf.mxu1 }
 0x18b   : > { %v2170_v46 = vpop.f32.mrf.mxu0  ;;  %v2191_v48 = vadd.f32 %v2190_v45, %v2189_v41 }
 0x18c   : > { %v1394_v47 = vadd.f32 %v2169_v44, %v2006_v42  ;;  %v2192_v49 = vpop.f32.mrf.mxu1 }
 0x18d   : > { %v2171_v50 = vpop.f32.mrf.mxu0 }
 0x18e   : > { %v1434_v51 = vadd.f32 %v2191_v48, %v1394_v47  ;;  %v2193_v52 = vpop.f32.mrf.mxu1 }
 0x1a7   : > { %v2211_v53 = vpop.f32.mrf.mxu0 }
 0x1a8   : > { %v2233_v54 = vpop.f32.mrf.mxu1 }
 0x1a9   : > { %v2212_v55 = vpop.f32.mrf.mxu0 }
 0x1aa   : > { %v2234_v56 = vpop.f32.mrf.mxu1  ;;  %v2213_v5 = vadd.f32 %v2212_v55, %v2211_v53 }
 0x1ab   : > { %v2214_v57 = vpop.f32.mrf.mxu0  ;;  %v2235_v7 = vadd.f32 %v2234_v56, %v2233_v54 }
 0x1ac   : > { %v2236_v58 = vpop.f32.mrf.mxu1  ;;  %v1474_v6 = vadd.f32 %v2213_v5, %v1434_v51 }
 0x1ad   : > { %v2215_v59 = vpop.f32.mrf.mxu0 }
 0x1ae   : > { %v2237_v60 = vpop.f32.mrf.mxu1  ;;  %v1514_v9 = vadd.f32 %v2235_v7, %v1474_v6 }
 0x1c7   : > { %v2255_v61 = vpop.f32.mrf.mxu0 }
 0x1c8   : > { %v2277_v62 = vpop.f32.mrf.mxu1 }
 0x1c9   : > { %v2256_v63 = vpop.f32.mrf.mxu0 }
 0x1ca   : > { %v2278_v0 = vpop.f32.mrf.mxu1  ;;  %v2257_v8 = vadd.f32 %v2256_v63, %v2255_v61 }
 0x1cb   : > { %v2258_v1 = vpop.f32.mrf.mxu0  ;;  %v2279_v11 = vadd.f32 %v2278_v0, %v2277_v62 }
 0x1cc   : > { %v2280_v2 = vpop.f32.mrf.mxu1  ;;  %v1554_v10 = vadd.f32 %v2257_v8, %v1514_v9 }
 0x1cd   : > { %v2259_v3 = vpop.f32.mrf.mxu0 }
 0x1ce   : > { %v2281_v4 = vpop.f32.mrf.mxu1  ;;  %v1594_v16 = vadd.f32 %v2279_v11, %v1554_v10 }
 0x1e7   : > { %v2299_v12 = vpop.f32.mrf.mxu0 }
 0x1e8   : > { %v1673_v13 = vpop.f32.mrf.mxu1 }
 0x1e9   : > { %v2300_v14 = vpop.f32.mrf.mxu0 }
 0x1ea   : > { %v2332_v15 = vpop.f32.mrf.mxu1  ;;  %v2301_v17 = vadd.f32 %v2300_v14, %v2299_v12 }
 0x1eb   : > { %v2302_v18 = vpop.f32.mrf.mxu0 }
 0x1ec   : > { %v1676_v19 = vpop.f32.mrf.mxu1  ;;  %v1634_v20 = vadd.f32 %v2301_v17, %v1594_v16 }
 0x1ed   : > { %v2303_v21 = vpop.f32.mrf.mxu0 }
 0x1ee   : > { %v2333_v22 = vpop.f32.mrf.mxu1  ;;  %v1674_v23 = vadd.f32 %v1673_v13, %v1634_v20 }
 0x1f0   : > { %v1679_v24 = vmax.f32 %v1674_v23, 0.0 }
 0x1f2   : > { %v1680_v25 = vpack.c.bf16 %v1679_v24, %v1679_v24 }
 0x1f4   : > { %1822 = vmatmul.mubr.bf16.vlgmr.msra.gmra.mxu0 %v1680_v25 }
 0x2b4   : > { %v1823_v33 = vpop.f32.mrf.mxu0 }
 0x2b5   : > { %v1824_v34 = vadd.f32 %v1823_v33, %v1702_v31 }
 0x2b6   : > { %v1825_v35 = vpop.f32.mrf.mxu0 }
 0x2b7   : > { %1830 = vst [vmem:[%s360_s15] sm:$0xff] %v1824_v34  ;;  %v1826_v36 = vadd.f32 %v1825_v35, %v1706_v32 }
 0x2b8   : > { %v1827_v37 = vpop.f32.mrf.mxu0 }
 0x2b9   : > { %1831 = vst [vmem:[%s360_s15 + $0x8] sm:$0xff] %v1826_v36 }
 0x2ba   : > { %v1828_v38 = vpop.f32.mrf.mxu0 }
 0x2bb   : > { %2711 = shalt.err (!%p2708_p0)
}
 0x2bc   : > { %s2712_s16 = scalar_lea.hbm %s3209_s27, 256  ;;  %s2716_s7 = scalar_lea.hbm %s3256_s5, 768 }
 0x2bd   : > { %p2713_p10 = scmp.ne.s32.totalorder %s3209_s27, %s2712_s16  ;;  %p2717_p11 = scmp.lt.s32.totalorder %s3209_s27, %s3256_s5 }
 0x2be   : > { %p2718_p7 = scmp.lt.s32.totalorder %s2716_s7, %s2712_s16 }
 0x2bf   : > { %p2714_p12 = pnand %p2713_p10, %p3287_p6 }
 0x2c0   : > { %p2719_p5 = por %p2718_p7, %p2717_p11 }
 0x2c1   : > { %p2715_p13 = pneg %p2714_p12 }
 0x2c3   : > { %p2720_p4 = pnand %p2719_p5, %p2715_p13 }
 0x2c5   : > { %2723 = shalt.err (!%p2720_p4)
}
 0x2c6   : > { %2348 = dma.vmem_to_hbm [thread:$0]  (%p3287_p6), %s3211_s17, 256, %s3209_s27, %s1833_s30  }
 0x2c7 PF: > { %p2374_p2 = scmp.ge.s32.totalorder %s2770_s21, 2  ;;  %s1859_s24 = sand.u32 1, %s2758_s18  }
 0x2c8   : > { %p3288_p3 = scmp.ne.s32.totalorder %s3278_s28, 0  ;;  %s1860_s9 = scalar_lea.sflag [#allocation4], %s1859_s24 }
 0x2ca   : > { %p2368_p8 = pnand %p2374_p2, %p3288_p3 }
 0x2cc   : > { %p2369_p9 = pneg %p2368_p8 }
 0x2ce   : > { %2753 = dma.done.wait (%p2369_p9), %s1860_s9, 256  }
 0x2cf   : > { %2755 = vsyncadd (%p2369_p9), %s1860_s9, 4294967040  ;;  %s3289_s21 = sld [smem:[#allocation17_spill]]  ;;  %s3292_s18 = smov %s2762_s19 }
 0x2d0   : > { %s3290_s10 = sld [smem:[#allocation16_spill]] }
 0x2d1   : > { %s3291_s20 = sld [smem:[#allocation18_spill]] }
 0x2d5   : > { %p22_p1 = scmp.ge.s32.totalorder %s3289_s21, 5  }
 0x2d6   : > { %s3293_s19 = smov %s3290_s10 }
 0x2d7   :  { %24 = sbr.rel (!%p22_p1) target bundleno = 11 (0xb), region = 125 }
 0x2dc   :  { %1865 = vsyncpa [#allocation3], 1 }
 0x2dd   :  { %1867 = vsyncpa [#allocation3 + $0x1], 1 }
 0x2de   :  { %1868 = vsyncpa [#allocation6], 1 }
 0x2df   :  { %1870 = vsyncpa [#allocation6 + $0x1], 1 }
 0x2e0   :  { %1871 = vsyncpa [#allocation9], 1 }
 0x2e1   :  { %1873 = vsyncpa [#allocation9 + $0x1], 1 }
 0x2e2   :  { %1874 = vsyncpa [#allocation4], 1 }
 0x2e3   :  { %1876 = vsyncpa [#allocation4 + $0x1], 1 }

</bundles_post_ra>
